<compile_context>
chip_gen: v7x
topology: tpu7x:2x2x1
jax: 0.10.0
libtpu: 0.0.40
codegen_flags: <defaults>
</compile_context>

<pallas_src>
import jax
import jax.numpy as jnp
from jax import lax
from jax.experimental import pallas as pl
from jax.experimental.pallas import tpu as pltpu


def _conv3x3_bn_relu6_kernel(x_ref, w_ref, b_ref, o_ref):
    # x_ref : (1, H*W, Cin)  f32   one image, spatial flattened row-major (H, W)
    # w_ref : (3, 3, Cin, Cout) bf16  conv weights with BN scale pre-folded
    # b_ref : (1, Cout) f32   folded BN bias
    # o_ref : (1, Ho, Wo, Cout) f32 with Ho = H-2, Wo = W-2 (valid conv, stride 1)
    HW = x_ref.shape[1]
    _, Ho, Wo, Cout = o_ref.shape
    W = Wo + 2

    x = x_ref[0]                                             # (H*W, Cin) f32

    # kw-shifted copies via sublane roll (XLU) — no unaligned sublane slices.
    # Cast once to bf16 so the MXU sees bf16 operands (accumulation stays f32).
    xs = [x.astype(jnp.bfloat16)]
    for kw in (1, 2):
        xs.append(pltpu.roll(x, shift=HW - kw, axis=0).astype(jnp.bfloat16))

    # 3x3 conv as 9 accumulated MXU matmuls contracting over Cin (lane dim).
    # Shifted/wrapped garbage only lands in output columns j >= Wo, dropped below.
    acc = None
    for kh in range(3):
        base = kh * W                                        # aligned row offset
        for kw in range(3):
            lhs = xs[kw][base:base + Ho * W]                 # (Ho*W, Cin) bf16
            p = jnp.dot(lhs, w_ref[kh, kw],
                        preferred_element_type=jnp.float32)  # (Ho*W, Cout) f32
            acc = p if acc is None else acc + p              # init from first tap

    # Folded-BN bias + ReLU6 epilogue, then drop the 2 invalid W columns.
    y = jnp.clip(acc + b_ref[...], 0.0, 6.0)                 # (Ho*W, Cout)
    y = y.reshape(Ho, W, Cout)[:, :Wo, :]                    # (Ho, Wo, Cout)
    o_ref[0] = y.astype(o_ref.dtype)


def conv_block_nhwc(x_nhwc, conv_w_oihw, bn, eps=1e-5):
    """NHWC-in / NHWC-out core (use this form when chaining blocks in a model).

    x_nhwc:      (N, H, W, Cin) float32
    conv_w_oihw: (Cout, Cin, 3, 3) PyTorch-layout conv weight (bias=False)
    bn:          dict(gamma, beta, mean, var) each (Cout,)
    returns      (N, H-2, W-2, Cout) float32
    """
    N, H, W, Cin = x_nhwc.shape
    Cout = conv_w_oihw.shape[0]
    Ho, Wo = H - 2, W - 2

    # Fold BN scale into the conv weights; keep only the bias for the epilogue.
    s = bn["gamma"] / jnp.sqrt(bn["var"] + eps)                       # (Cout,)
    b = (bn["beta"] - bn["mean"] * s).reshape(1, Cout).astype(jnp.float32)
    w = jnp.transpose(conv_w_oihw, (2, 3, 1, 0))                      # (3,3,Cin,Cout)
    w = (w * s[None, None, None, :]).astype(jnp.bfloat16)

    x_flat = x_nhwc.reshape(N, H * W, Cin)                            # free reshape

    out_nhwc = pl.pallas_call(
        _conv3x3_bn_relu6_kernel,
        out_shape=jax.ShapeDtypeStruct((N, Ho, Wo, Cout), jnp.float32),
        grid_spec=pltpu.PrefetchScalarGridSpec(
            num_scalar_prefetch=0,
            grid=(N,),
            in_specs=[
                pl.BlockSpec((1, H * W, Cin), lambda n: (n, 0, 0)),
                pl.BlockSpec((3, 3, Cin, Cout), lambda n: (0, 0, 0, 0)),
                pl.BlockSpec((1, Cout), lambda n: (0, 0)),
            ],
            out_specs=pl.BlockSpec((1, Ho, Wo, Cout), lambda n: (n, 0, 0, 0)),
        ),
        compiler_params=pltpu.CompilerParams(
            dimension_semantics=("parallel",),
            vmem_limit_bytes=32 * 1024 * 1024,
        ),
    )(x_flat, w, b)
    return out_nhwc


def conv_block(x_nchw, conv_w, bn, eps=1e-5):
    """NCHW boundary wrapper matching the PyTorch nn.Module convention."""
    x = jnp.transpose(x_nchw, (0, 2, 3, 1))            # NCHW -> NHWC (boundary only)
    y = conv_block_nhwc(x, conv_w, bn, eps)
    return jnp.transpose(y, (0, 3, 1, 2))              # NHWC -> NCHW


def _reference(x, conv_w, bn, eps=1e-5):
    """Pure-JAX reference (NCHW, mirrors PyTorch eval-mode semantics)."""
    y = lax.conv_general_dilated(
        x, conv_w, window_strides=(1, 1), padding="VALID",
        dimension_numbers=("NCHW", "OIHW", "NCHW"))
    s = bn["gamma"] / jnp.sqrt(bn["var"] + eps)
    y = y * s[None, :, None, None] + (bn["beta"] - bn["mean"] * s)[None, :, None, None]
    return jnp.clip(y, 0.0, 6.0)


if __name__ == "__main__":
    N, Cin, Cout, H, W = 2, 4, 8, 16, 16
    key = jax.random.PRNGKey(0)
    k = jax.random.split(key, 6)

    x = jax.random.normal(k[0], (N, Cin, H, W), jnp.float32)
    conv_w = jax.random.normal(k[1], (Cout, Cin, 3, 3), jnp.float32) * 0.3
    bn = dict(
        gamma=1.0 + 0.1 * jax.random.normal(k[2], (Cout,), jnp.float32),
        beta=0.1 * jax.random.normal(k[3], (Cout,), jnp.float32),
        mean=0.05 * jax.random.normal(k[4], (Cout,), jnp.float32),
        var=jnp.abs(1.0 + 0.1 * jax.random.normal(k[5], (Cout,), jnp.float32)),
    )

    out = jax.block_until_ready(conv_block(x, conv_w, bn))
    ref = jax.block_until_ready(_reference(x, conv_w, bn))

    assert out.shape == (N, Cout, H - 2, W - 2)
    max_err = float(jnp.max(jnp.abs(out - ref)))
    assert jnp.allclose(out, ref, atol=5e-2, rtol=5e-2), max_err
    print("KERNEL_OK")
</pallas_src>

<mosaic_0001>
module attributes {stable_mosaic.version = 11 : i64} {
  func.func @_conv3x3_bn_relu6_kernel(%arg0: i32, %arg1: memref<1x256x4xf32, #tpu.memory_space<vmem>>, %arg2: memref<3x3x4x8xbf16, #tpu.memory_space<vmem>>, %arg3: memref<1x8xf32, #tpu.memory_space<vmem>>, %arg4: memref<1x14x14x8xf32, #tpu.memory_space<vmem>>) attributes {dimension_semantics = [#tpu.dimension_semantics<parallel>], iteration_bounds = array<i64: 2>, scalar_prefetch = 0 : i64, scratch_operands = 0 : i64, tpu.core_type = #tpu.core_type<tc>, window_params = [{transform_indices = @transform_0, window_bounds = array<i64: 1, 256, 4>}, {pipeline_mode = #tpu.pipeline_mode<synchronous>, transform_indices = @transform_1, window_bounds = array<i64: 3, 3, 4, 8>}, {pipeline_mode = #tpu.pipeline_mode<synchronous>, transform_indices = @transform_2, window_bounds = array<i64: 1, 8>}, {transform_indices = @transform_3, window_bounds = array<i64: 1, 14, 14, 8>}]} {
    %c0 = arith.constant 0 : index
    %c0_0 = arith.constant 0 : index
    %c0_1 = arith.constant 0 : index
    %0 = vector.load %arg1[%c0, %c0_0, %c0_1] : memref<1x256x4xf32, #tpu.memory_space<vmem>>, vector<1x256x4xf32>
    %1 = vector.shape_cast %0 : vector<1x256x4xf32> to vector<256x4xf32>
    %2 = arith.truncf %1 : vector<256x4xf32> to vector<256x4xbf16>
    %c255_i32 = arith.constant 255 : i32
    %3 = tpu.dynamic_rotate %1 by %c255_i32 dim 0 : vector<256x4xf32>, i32 -> vector<256x4xf32>
    %4 = arith.truncf %3 : vector<256x4xf32> to vector<256x4xbf16>
    %c254_i32 = arith.constant 254 : i32
    %5 = tpu.dynamic_rotate %1 by %c254_i32 dim 0 : vector<256x4xf32>, i32 -> vector<256x4xf32>
    %6 = arith.truncf %5 : vector<256x4xf32> to vector<256x4xbf16>
    %7 = vector.extract_strided_slice %2 {offsets = [0, 0], sizes = [224, 4], strides = [1, 1]} : vector<256x4xbf16> to vector<224x4xbf16>
    %c0_2 = arith.constant 0 : index
    %c0_3 = arith.constant 0 : index
    %c0_4 = arith.constant 0 : index
    %c0_5 = arith.constant 0 : index
    %8 = vector.load %arg2[%c0_2, %c0_3, %c0_4, %c0_5] : memref<3x3x4x8xbf16, #tpu.memory_space<vmem>>, vector<1x1x4x8xbf16>
    %9 = vector.shape_cast %8 : vector<1x1x4x8xbf16> to vector<4x8xbf16>
    %cst = arith.constant dense<0.000000e+00> : vector<224x8xf32>
    %10 = tpu.matmul %7, %9, %cst {dimension_numbers = #tpu.dot_dimension_numbers<[1], [0], [0], [1], [0, 0, 1, 1], [], []>} : vector<224x4xbf16>, vector<4x8xbf16>, vector<224x8xf32> -> vector<224x8xf32>
    %11 = vector.extract_strided_slice %4 {offsets = [0, 0], sizes = [224, 4], strides = [1, 1]} : vector<256x4xbf16> to vector<224x4xbf16>
    %c0_6 = arith.constant 0 : index
    %c1 = arith.constant 1 : index
    %c0_7 = arith.constant 0 : index
    %c0_8 = arith.constant 0 : index
    %12 = vector.load %arg2[%c0_6, %c1, %c0_7, %c0_8] : memref<3x3x4x8xbf16, #tpu.memory_space<vmem>>, vector<1x1x4x8xbf16>
    %13 = vector.shape_cast %12 : vector<1x1x4x8xbf16> to vector<4x8xbf16>
    %cst_9 = arith.constant dense<0.000000e+00> : vector<224x8xf32>
    %14 = tpu.matmul %11, %13, %cst_9 {dimension_numbers = #tpu.dot_dimension_numbers<[1], [0], [0], [1], [0, 0, 1, 1], [], []>} : vector<224x4xbf16>, vector<4x8xbf16>, vector<224x8xf32> -> vector<224x8xf32>
    %15 = arith.addf %10, %14 : vector<224x8xf32>
    %16 = vector.extract_strided_slice %6 {offsets = [0, 0], sizes = [224, 4], strides = [1, 1]} : vector<256x4xbf16> to vector<224x4xbf16>
    %c0_10 = arith.constant 0 : index
    %c2 = arith.constant 2 : index
    %c0_11 = arith.constant 0 : index
    %c0_12 = arith.constant 0 : index
    %17 = vector.load %arg2[%c0_10, %c2, %c0_11, %c0_12] : memref<3x3x4x8xbf16, #tpu.memory_space<vmem>>, vector<1x1x4x8xbf16>
    %18 = vector.shape_cast %17 : vector<1x1x4x8xbf16> to vector<4x8xbf16>
    %cst_13 = arith.constant dense<0.000000e+00> : vector<224x8xf32>
    %19 = tpu.matmul %16, %18, %cst_13 {dimension_numbers = #tpu.dot_dimension_numbers<[1], [0], [0], [1], [0, 0, 1, 1], [], []>} : vector<224x4xbf16>, vector<4x8xbf16>, vector<224x8xf32> -> vector<224x8xf32>
    %20 = arith.addf %15, %19 : vector<224x8xf32>
    %21 = vector.extract_strided_slice %2 {offsets = [16, 0], sizes = [224, 4], strides = [1, 1]} : vector<256x4xbf16> to vector<224x4xbf16>
    %c1_14 = arith.constant 1 : index
    %c0_15 = arith.constant 0 : index
    %c0_16 = arith.constant 0 : index
    %c0_17 = arith.constant 0 : index
    %22 = vector.load %arg2[%c1_14, %c0_15, %c0_16, %c0_17] : memref<3x3x4x8xbf16, #tpu.memory_space<vmem>>, vector<1x1x4x8xbf16>
    %23 = vector.shape_cast %22 : vector<1x1x4x8xbf16> to vector<4x8xbf16>
    %cst_18 = arith.constant dense<0.000000e+00> : vector<224x8xf32>
    %24 = tpu.matmul %21, %23, %cst_18 {dimension_numbers = #tpu.dot_dimension_numbers<[1], [0], [0], [1], [0, 0, 1, 1], [], []>} : vector<224x4xbf16>, vector<4x8xbf16>, vector<224x8xf32> -> vector<224x8xf32>
    %25 = arith.addf %20, %24 : vector<224x8xf32>
    %26 = vector.extract_strided_slice %4 {offsets = [16, 0], sizes = [224, 4], strides = [1, 1]} : vector<256x4xbf16> to vector<224x4xbf16>
    %c1_19 = arith.constant 1 : index
    %c1_20 = arith.constant 1 : index
    %c0_21 = arith.constant 0 : index
    %c0_22 = arith.constant 0 : index
    %27 = vector.load %arg2[%c1_19, %c1_20, %c0_21, %c0_22] : memref<3x3x4x8xbf16, #tpu.memory_space<vmem>>, vector<1x1x4x8xbf16>
    %28 = vector.shape_cast %27 : vector<1x1x4x8xbf16> to vector<4x8xbf16>
    %cst_23 = arith.constant dense<0.000000e+00> : vector<224x8xf32>
    %29 = tpu.matmul %26, %28, %cst_23 {dimension_numbers = #tpu.dot_dimension_numbers<[1], [0], [0], [1], [0, 0, 1, 1], [], []>} : vector<224x4xbf16>, vector<4x8xbf16>, vector<224x8xf32> -> vector<224x8xf32>
    %30 = arith.addf %25, %29 : vector<224x8xf32>
    %31 = vector.extract_strided_slice %6 {offsets = [16, 0], sizes = [224, 4], strides = [1, 1]} : vector<256x4xbf16> to vector<224x4xbf16>
    %c1_24 = arith.constant 1 : index
    %c2_25 = arith.constant 2 : index
    %c0_26 = arith.constant 0 : index
    %c0_27 = arith.constant 0 : index
    %32 = vector.load %arg2[%c1_24, %c2_25, %c0_26, %c0_27] : memref<3x3x4x8xbf16, #tpu.memory_space<vmem>>, vector<1x1x4x8xbf16>
    %33 = vector.shape_cast %32 : vector<1x1x4x8xbf16> to vector<4x8xbf16>
    %cst_28 = arith.constant dense<0.000000e+00> : vector<224x8xf32>
    %34 = tpu.matmul %31, %33, %cst_28 {dimension_numbers = #tpu.dot_dimension_numbers<[1], [0], [0], [1], [0, 0, 1, 1], [], []>} : vector<224x4xbf16>, vector<4x8xbf16>, vector<224x8xf32> -> vector<224x8xf32>
    %35 = arith.addf %30, %34 : vector<224x8xf32>
    %36 = vector.extract_strided_slice %2 {offsets = [32, 0], sizes = [224, 4], strides = [1, 1]} : vector<256x4xbf16> to vector<224x4xbf16>
    %c2_29 = arith.constant 2 : index
    %c0_30 = arith.constant 0 : index
    %c0_31 = arith.constant 0 : index
    %c0_32 = arith.constant 0 : index
    %37 = vector.load %arg2[%c2_29, %c0_30, %c0_31, %c0_32] : memref<3x3x4x8xbf16, #tpu.memory_space<vmem>>, vector<1x1x4x8xbf16>
    %38 = vector.shape_cast %37 : vector<1x1x4x8xbf16> to vector<4x8xbf16>
    %cst_33 = arith.constant dense<0.000000e+00> : vector<224x8xf32>
    %39 = tpu.matmul %36, %38, %cst_33 {dimension_numbers = #tpu.dot_dimension_numbers<[1], [0], [0], [1], [0, 0, 1, 1], [], []>} : vector<224x4xbf16>, vector<4x8xbf16>, vector<224x8xf32> -> vector<224x8xf32>
    %40 = arith.addf %35, %39 : vector<224x8xf32>
    %41 = vector.extract_strided_slice %4 {offsets = [32, 0], sizes = [224, 4], strides = [1, 1]} : vector<256x4xbf16> to vector<224x4xbf16>
    %c2_34 = arith.constant 2 : index
    %c1_35 = arith.constant 1 : index
    %c0_36 = arith.constant 0 : index
    %c0_37 = arith.constant 0 : index
    %42 = vector.load %arg2[%c2_34, %c1_35, %c0_36, %c0_37] : memref<3x3x4x8xbf16, #tpu.memory_space<vmem>>, vector<1x1x4x8xbf16>
    %43 = vector.shape_cast %42 : vector<1x1x4x8xbf16> to vector<4x8xbf16>
    %cst_38 = arith.constant dense<0.000000e+00> : vector<224x8xf32>
    %44 = tpu.matmul %41, %43, %cst_38 {dimension_numbers = #tpu.dot_dimension_numbers<[1], [0], [0], [1], [0, 0, 1, 1], [], []>} : vector<224x4xbf16>, vector<4x8xbf16>, vector<224x8xf32> -> vector<224x8xf32>
    %45 = arith.addf %40, %44 : vector<224x8xf32>
    %46 = vector.extract_strided_slice %6 {offsets = [32, 0], sizes = [224, 4], strides = [1, 1]} : vector<256x4xbf16> to vector<224x4xbf16>
    %c2_39 = arith.constant 2 : index
    %c2_40 = arith.constant 2 : index
    %c0_41 = arith.constant 0 : index
    %c0_42 = arith.constant 0 : index
    %47 = vector.load %arg2[%c2_39, %c2_40, %c0_41, %c0_42] : memref<3x3x4x8xbf16, #tpu.memory_space<vmem>>, vector<1x1x4x8xbf16>
    %48 = vector.shape_cast %47 : vector<1x1x4x8xbf16> to vector<4x8xbf16>
    %cst_43 = arith.constant dense<0.000000e+00> : vector<224x8xf32>
    %49 = tpu.matmul %46, %48, %cst_43 {dimension_numbers = #tpu.dot_dimension_numbers<[1], [0], [0], [1], [0, 0, 1, 1], [], []>} : vector<224x4xbf16>, vector<4x8xbf16>, vector<224x8xf32> -> vector<224x8xf32>
    %50 = arith.addf %45, %49 : vector<224x8xf32>
    %c0_44 = arith.constant 0 : index
    %c0_45 = arith.constant 0 : index
    %51 = vector.load %arg3[%c0_44, %c0_45] : memref<1x8xf32, #tpu.memory_space<vmem>>, vector<1x8xf32>
    %52 = vector.broadcast %51 : vector<1x8xf32> to vector<224x8xf32>
    %53 = arith.addf %50, %52 : vector<224x8xf32>
    %cst_46 = arith.constant 0.000000e+00 : f32
    %cst_47 = arith.constant 6.000000e+00 : f32
    %54 = vector.broadcast %cst_46 : f32 to vector<224x8xf32>
    %55 = arith.maximumf %54, %53 : vector<224x8xf32>
    %56 = vector.broadcast %cst_47 : f32 to vector<224x8xf32>
    %57 = arith.minimumf %56, %55 : vector<224x8xf32>
    %58 = vector.shape_cast %57 : vector<224x8xf32> to vector<14x16x8xf32>
    %59 = vector.extract_strided_slice %58 {offsets = [0, 0, 0], sizes = [14, 14, 8], strides = [1, 1, 1]} : vector<14x16x8xf32> to vector<14x14x8xf32>
    %c0_48 = arith.constant 0 : index
    %c0_49 = arith.constant 0 : index
    %c0_50 = arith.constant 0 : index
    %c0_51 = arith.constant 0 : index
    %60 = vector.load %arg4[%c0_48, %c0_49, %c0_50, %c0_51] : memref<1x14x14x8xf32, #tpu.memory_space<vmem>>, vector<1x14x14x8xf32>
    %61 = vector.shape_cast %60 : vector<1x14x14x8xf32> to vector<14x14x8xf32>
    %62 = vector.shape_cast %59 : vector<14x14x8xf32> to vector<1x14x14x8xf32>
    tpu.vector_store %arg4[%c0_48, %c0_49, %c0_50, %c0_51], %62 {strides = array<i32>} : memref<1x14x14x8xf32, #tpu.memory_space<vmem>>, vector<1x14x14x8xf32>,
    return
  }
  func.func @transform_0(%arg0: i32) -> (i32, i32, i32) {
    %c0_i32 = arith.constant 0 : i32
    %c0_i32_0 = arith.constant 0 : i32
    %c0_i32_1 = arith.constant 0 : i32
    return %arg0, %c0_i32, %c0_i32_0 : i32, i32, i32
  }
  func.func @transform_1(%arg0: i32) -> (i32, i32, i32, i32) {
    %c0_i32 = arith.constant 0 : i32
    %c0_i32_0 = arith.constant 0 : i32
    %c0_i32_1 = arith.constant 0 : i32
    %c0_i32_2 = arith.constant 0 : i32
    %c0_i32_3 = arith.constant 0 : i32
    return %c0_i32, %c0_i32_0, %c0_i32_1, %c0_i32_2 : i32, i32, i32, i32
  }
  func.func @transform_2(%arg0: i32) -> (i32, i32) {
    %c0_i32 = arith.constant 0 : i32
    %c0_i32_0 = arith.constant 0 : i32
    %c0_i32_1 = arith.constant 0 : i32
    return %c0_i32, %c0_i32_0 : i32, i32
  }
  func.func @transform_3(%arg0: i32) -> (i32, i32, i32, i32) {
    %c0_i32 = arith.constant 0 : i32
    %c0_i32_0 = arith.constant 0 : i32
    %c0_i32_1 = arith.constant 0 : i32
    %c0_i32_2 = arith.constant 0 : i32
    return %arg0, %c0_i32, %c0_i32_0, %c0_i32_1 : i32, i32, i32, i32
  }
}

</mosaic_0001>

<bundles_post_ra>
// kernel: tpu_custom_call.1
= control target key start
LH: loop header
LB: loop body
LE: loop exit
PB: predicated region body
PF: predicated region fallthrough
CT: control target
= control target key end

     0   :  { %s3075_s12 = smov 0   ;;  %s3957_s0 = inlined_call_operand.vmem [shape: f32[2,256,4], index: 0, kind: input, shape index: {}]   ;;  %s3958_s1 = inlined_call_operand.vmem [shape: bf16[3,3,4,8], index: 1, kind: input, shape index: {}]   ;;  %s3959_s2 = inlined_call_operand.vmem [shape: f32[1,8], index: 2, kind: input, shape index: {}]   ;;  %s3960_s3 = inlined_call_operand.vmem [shape: f32[2,14,14,8], index: 3, kind: output, shape index: {}]  }
   0x1 LB: > { %s2251_s13 = sadd.s32 4294967295, %s3053_s12   ;;  %p2255_p0 = scmp.ge.s32.totalorder %s3053_s12, 1  ;;  %s3053_s12 = sphi %s3075_s12, %s13_s12  }
   0x2   : > { %p137_p1 = scmp.lt.s32.totalorder %s3053_s12, 3 }
   0x4   : > { %p138_p2 = pnand %p2255_p0, %p137_p1 }
   0x6   : > { %141 = sbr.rel (%p138_p2) target bundleno = 499 (0x1f3), region = 32 }
   0xd   : > { %vm430_vm0 = vcmask 1041408   ;;  %v3086_v0 = vld [vmem:[%s3958_s1 + $0x8] sm:$0x3]  ;;  %v2259_v1 = vld [vmem:[%s3958_s1 + $0x2] sm:$0x3]  ;;  %p161_p3 = scmp.lt.s32.totalorder %s2251_s13, 1  ;;  %v252_v2 = vlaneseq }
   0xe   : > { %3032 = vmatprep.subr.msk.bf16.mxu0 %vm430_vm0, %v3086_v0  ;;  %3028 = vmatprep.subr.msk.bf16.mxu1 %vm430_vm0, %v2259_v1  ;;  %v3096_v3 = vsel %vm430_vm0, %v3086_v0, 0  ;;  %v432_v4 = vsel %vm430_vm0, %v2259_v1, 0  ;;  %v2333_v5 = vld [vmem:[%s3958_s1 + $0xa] sm:$0x3]  ;;  %v384_v7 = vld [vmem:[%s3958_s1] sm:$0x3] }
   0xf   : > { %3977 = vst [vmem:[#allocation2_spill] sm:$0xff] %v3096_v3  ;;  %2653 = vmatpush3.bf16.msra.mxu0 %v3096_v3  ;;  %2533 = vmatpush3.bf16.msra.mxu1 %v432_v4  ;;  %s3999_s13 = smov (!%p161_p3, %s2251_s13), 1  ;;  %v3105_v6 = vshrl.u32 %v252_v2, 7  ;;  %vm387_vm2 = vcmask 31744   ;;  %v1357_v32 = vsel %vm430_vm0, %v2333_v5, 0  ;;  %v622_v33 = vsel %vm430_vm0, %v384_v7, 0 }
  0x10   : > { %3034 = vmatprep.subr.msk.bf16.mxu0 %vm430_vm0, %v2333_v5  ;;  %3029 = vmatprep.subr.msk.bf16.mxu1 %vm430_vm0, %v384_v7  ;;  %s2396_s22 = sshll.u32 %s3999_s13, 8  ;;  %v3201_v48 = vld [vmem:[%s3958_s1 + $0xc] sm:$0x3]  ;;  %v3206_v49 = vld [vmem:[%s3958_s1 + $0x4] sm:$0x3]  ;;  %s3038_s11 = smul.u32 224, %s3999_s13 }
  0x11   : > { %s3116_s25 = scalar_lea.vmem %s3957_s0, %s2396_s22  ;;  %vm254_vm1 = vcmp.lt.s32.totalorder %v3105_v6, 7  ;;  %vm335_vm3 = vcmp.lt.s32.totalorder %v3105_v6, 6  ;;  %vm2166_vm4 = vcmask 64512   ;;  %vm2168_vm5 = vcmask 62464  }
  0x12   : > { %v3119_v8 = vld [vmem:[%s3116_s25] sm:$0xff]  ;;  %v3122_v9 = vld [vmem:[%s3116_s25 + $0x8] sm:$0xff]  ;;  %v3125_v10 = vld [vmem:[%s3116_s25 + $0x10] sm:$0xff]  ;;  %s3865_s16 = scalar_lea.vmem %s3960_s3, %s3038_s11 }
  0x13   : > { %v3962_v11 = vrot.slane %v3119_v8, 1  ;;  %v221_v12 = vrot.slane %v3122_v9, 1  ;;  %v222_v13 = vrot.slane %v3125_v10, 1  ;;  %v3132_v14 = vld [vmem:[%s3116_s25 + $0x18] sm:$0xff]  ;;  %v3135_v15 = vld [vmem:[%s3116_s25 + $0x20] sm:$0xff]  ;;  %v3139_v17 = vld [vmem:[%s3116_s25 + $0x28] sm:$0xff] }
  0x14   : > { %v223_v16 = vrot.slane %v3132_v14, 1  ;;  %v3142_v18 = vld [vmem:[%s3116_s25 + $0x30] sm:$0xff]  ;;  %v224_v21 = vrot.slane %v3135_v15, 1  ;;  %v3152_v22 = vld [vmem:[%s3116_s25 + $0x38] sm:$0xff]  ;;  %v3155_v23 = vld [vmem:[%s3116_s25 + $0x40] sm:$0xff]  ;;  %v225_v26 = vrot.slane %v3139_v17, 1 }
  0x15   : > { %v284_v19 = vsel %vm254_vm1, %v221_v12, %v222_v13  ;;  %v285_v20 = vsel %vm254_vm1, %v3962_v11, %v221_v12  ;;  %v3161_v27 = vld [vmem:[%s3116_s25 + $0x48] sm:$0xff]  ;;  %v3164_v28 = vld [vmem:[%s3116_s25 + $0x50] sm:$0xff]  ;;  %v3167_v29 = vld [vmem:[%s3116_s25 + $0x58] sm:$0xff]  ;;  %v226_v31 = vrot.slane %v3142_v18, 1  ;;  %v227_v37 = vrot.slane %v3152_v22, 1 }
  0x16   : > { %v287_v24 = vpack.c.bf16 %v284_v19, %v285_v20  ;;  %v283_v25 = vsel %vm254_vm1, %v222_v13, %v223_v16  ;;  %v282_v30 = vsel %vm254_vm1, %v223_v16, %v224_v21  ;;  %v3175_v34 = vld [vmem:[%s3116_s25 + $0x60] sm:$0xff]  ;;  %v281_v36 = vsel %vm254_vm1, %v224_v21, %v225_v26  ;;  %v3223_v54 = vld [vmem:[%s3116_s25 + $0x68] sm:$0xff]  ;;  %v3226_v55 = vld [vmem:[%s3116_s25 + $0x70] sm:$0xff] }
  0x17   : > { %v288_v35 = vpack.c.bf16 %v282_v30, %v283_v25  ;;  %v228_v38 = vrot.slane %v3155_v23, 1  ;;  %v280_v39 = vsel %vm254_vm1, %v225_v26, %v226_v31  ;;  %v229_v40 = vrot.slane %v3161_v27, 1  ;;  %v3233_v56 = vld [vmem:[%s3116_s25 + $0x78] sm:$0xff]  ;;  %v3236_v57 = vld [vmem:[%s3116_s25 + $0x80] sm:$0xff]  ;;  %v3263_v7 = vld [vmem:[%s3116_s25 + $0x88] sm:$0xff] }
  0x18   : > { %2534 = vmatprep.mubr.msk.bf16.mxu1 %vm387_vm2, %v287_v24  ;;  %v230_v41 = vrot.slane %v3164_v28, 1  ;;  %v231_v42 = vrot.slane %v3167_v29, 1  ;;  %v3189_v43 = vpack.c.bf16 %v280_v39, %v281_v36  ;;  %v279_v45 = vsel %vm254_vm1, %v226_v31, %v227_v37  ;;  %v3266_v12 = vld [vmem:[%s3116_s25 + $0x90] sm:$0xff]  ;;  %v3285_v26 = vld [vmem:[%s3116_s25 + $0x98] sm:$0xff]  ;;  %v3288_v30 = vld [vmem:[%s3116_s25 + $0xa0] sm:$0xff] }
  0x19   : > { %2654 = vmatprep.mubr.msk.bf16.mxu0 %vm387_vm2, %v288_v35  ;;  %2535 = vmatmul.mubr.msk.bf16.vlgmr.msra.gmra.mrb[0].mxu1 %vm387_vm2, %v288_v35  ;;  %v278_v44 = vsel %vm254_vm1, %v227_v37, %v228_v38  ;;  %v232_v46 = vrot.slane %v3175_v34, 1  ;;  %v277_v51 = vsel %vm254_vm1, %v228_v38, %v229_v40  ;;  %v233_v60 = vrot.slane %v3223_v54, 1  ;;  %v3300_v35 = vld [vmem:[%s3116_s25 + $0xb0] sm:$0xff] }
  0x1a   : > { %v3196_v47 = vpack.c.bf16 %v278_v44, %v279_v45  ;;  %2563 = vmatpush3.bf16.msra.mxu1 %v622_v33  ;;  %2655 = vmatmul.mubr.msk.bf16.vlgmr.msra.gmra.mrb[0].mxu0 %vm387_vm2, %v3189_v43  ;;  %v276_v50 = vsel %vm254_vm1, %v229_v40, %v230_v41  ;;  %v275_v53 = vsel %vm254_vm1, %v230_v41, %v231_v42  ;;  %v234_v61 = vrot.slane %v3226_v55, 1  ;;  %v3297_v33 = vld [vmem:[%s3116_s25 + $0xa8] sm:$0xff] }
  0x1b   : > { %2538 = vmatprep.mubr.msk.bf16.mxu1 %vm387_vm2, %v3189_v43  ;;  %2683 = vmatpush3.bf16.msra.mxu0 %v1357_v32  ;;  %v274_v52 = vsel %vm254_vm1, %v231_v42, %v232_v46  ;;  %v3238_v58 = vpack.c.bf16 %v276_v50, %v277_v51  ;;  %v235_v62 = vrot.slane %v3233_v56, 1  ;;  %v236_v63 = vrot.slane %v3236_v57, 1 }
  0x1c   : > { %2658 = vmatprep.mubr.msk.bf16.mxu0 %vm387_vm2, %v3196_v47  ;;  %3035 = vmatprep.subr.msk.bf16.mxu0 %vm430_vm0, %v3201_v48  ;;  %v3240_v59 = vpack.c.bf16 %v274_v52, %v275_v53  ;;  %v272_v1 = vsel %vm254_vm1, %v233_v60, %v234_v61  ;;  %v273_v2 = vsel %vm254_vm1, %v232_v46, %v233_v60  ;;  %v237_v19 = vrot.slane %v3263_v7, 1 }
  0x1d   : > { %3030 = vmatprep.subr.msk.bf16.mxu1 %vm430_vm0, %v3206_v49  ;;  %v270_v4 = vsel %vm254_vm1, %v235_v62, %v236_v63  ;;  %v271_v5 = vsel %vm254_vm1, %v234_v61, %v235_v62  ;;  %v3268_v13 = vpack.c.bf16 %v272_v1, %v273_v2  ;;  %v238_v20 = vrot.slane %v3266_v12, 1  ;;  %v3343_v62 = vld [vmem:[%s3116_s25 + $0xb8] sm:$0xff] }
  0x1e   : > { %v3270_v16 = vpack.c.bf16 %v270_v4, %v271_v5  ;;  %v305_v21 = vrot.slane %v3125_v10, 2  ;;  %v306_v24 = vrot.slane %v3132_v14, 2  ;;  %v307_v25 = vrot.slane %v3135_v15, 2 }
  0x1f   : > { %v268_v31 = vsel %vm254_vm1, %v237_v19, %v238_v20  ;;  %v269_v32 = vsel %vm254_vm1, %v236_v63, %v237_v19  ;;  %v239_v38 = vrot.slane %v3285_v26, 1  ;;  %v240_v39 = vrot.slane %v3288_v30, 1  ;;  %v3346_v63 = vld [vmem:[%s3116_s25 + $0xc0] sm:$0xff]  ;;  %v3357_v19 = vld [vmem:[%s3116_s25 + $0xc8] sm:$0xff] }
  0x20   : > { %3978 = vst [vmem:[#allocation3_spill] sm:$0xff] %v3270_v16  ;;  %v363_v36 = vsel %vm335_vm3, %v306_v24, %v307_v25  ;;  %v364_v37 = vsel %vm335_vm3, %v305_v21, %v306_v24  ;;  %v3310_v40 = vpack.c.bf16 %v268_v31, %v269_v32  ;;  %v241_v41 = vrot.slane %v3297_v33, 1 }
  0x21   : > { %2539 = vmatmul.mubr.msk.bf16.gmra.mrb[4].mxu1 %vm387_vm2, %v3196_v47  ;;  %v242_v42 = vrot.slane %v3300_v35, 1  ;;  %v3316_v44 = vpack.c.bf16 %v3152_v22, %v3142_v18  ;;  %v308_v45 = vrot.slane %v3139_v17, 2  ;;  %v309_v46 = vrot.slane %v3142_v18, 2 }
  0x22   : > { %2542 = vmatprep.mubr.msk.bf16.mxu1 %vm387_vm2, %v3238_v58  ;;  %2659 = vmatmul.mubr.msk.bf16.gmra.mrb[4].mxu0 %vm387_vm2, %v3238_v58  ;;  %3979 = vst [vmem:[#allocation4_spill] sm:$0xff] %v3310_v40  ;;  %v3320_v50 = vpack.c.bf16 %v363_v36, %v364_v37  ;;  %v310_v51 = vrot.slane %v3152_v22, 2  ;;  %v311_v52 = vrot.slane %v3155_v23, 2  ;;  %v266_v53 = vsel %vm254_vm1, %v239_v38, %v240_v39 }
  0x23   : > { %2662 = vmatprep.mubr.msk.bf16.mxu0 %vm387_vm2, %v3240_v59  ;;  %v267_v18 = vsel %vm254_vm1, %v238_v20, %v239_v38  ;;  %v3334_v60 = vpack.c.bf16 %v3167_v29, %v3164_v28  ;;  %v264_v22 = vsel %vm254_vm1, %v241_v41, %v242_v42  ;;  %v265_v61 = vsel %vm254_vm1, %v240_v39, %v241_v41  ;;  %v3360_v20 = vld [vmem:[%s3116_s25 + $0xd0] sm:$0xff] }
  0x24   : > { %v3961_v1 = vrot.slane %v3119_v8, 2  ;;  %v304_v2 = vrot.slane %v3122_v9, 2  ;;  %v361_v4 = vsel %vm335_vm3, %v308_v45, %v309_v46  ;;  %v362_v5 = vsel %vm335_vm3, %v307_v25, %v308_v45 }
  0x25   : > { %v3362_v24 = vpack.c.bf16 %v266_v53, %v267_v18  ;;  %v359_v31 = vsel %vm335_vm3, %v310_v51, %v311_v52  ;;  %v360_v32 = vsel %vm335_vm3, %v309_v46, %v310_v51  ;;  %v3370_v36 = vpack.c.bf16 %v3233_v56, %v3226_v55 }
  0x26   : > { %v3372_v37 = vpack.c.bf16 %v264_v22, %v265_v61  ;;  %v243_v25 = vrot.slane %v3343_v62, 1  ;;  %v244_v38 = vrot.slane %v3346_v63, 1  ;;  %v3376_v39 = vpack.c.bf16 %v361_v4, %v362_v5  ;;  %v3391_v4 = vld [vmem:[%s3116_s25 + $0xe0] sm:$0xff]  ;;  %v3394_v5 = vld [vmem:[%s3116_s25 + $0xe8] sm:$0xff] }
  0x27   : > { %3980 = vst [vmem:[#allocation5_spill] sm:$0xff] %v3362_v24  ;;  %v245_v41 = vrot.slane %v3357_v19, 1  ;;  %v246_v45 = vrot.slane %v3360_v20, 1  ;;  %v1538_v46 = vsel %vm430_vm0, %v3201_v48, 0  ;;  %v3382_v51 = vpack.c.bf16 %v359_v31, %v360_v32 }
  0x28   : > { %3981 = vst [vmem:[#allocation6_spill] sm:$0xff] %v3372_v37  ;;  %v312_v53 = vrot.slane %v3161_v27, 2  ;;  %v313_v18 = vrot.slane %v3164_v28, 2  ;;  %v314_v22 = vrot.slane %v3167_v29, 2  ;;  %v315_v61 = vrot.slane %v3175_v34, 2 }
  0x29   : > { %2543 = vmatmul.mubr.msk.bf16.gmra.mrb[8].mxu1 %vm387_vm2, %v3240_v59  ;;  %v3400_v48 = vsel %vm335_vm3, %v304_v2, %v305_v21  ;;  %v3406_v28 = vsel %vm335_vm3, %v3961_v1, %v304_v2  ;;  %v262_v29 = vsel %vm254_vm1, %v243_v25, %v244_v38  ;;  %v263_v31 = vsel %vm254_vm1, %v242_v42, %v243_v25  ;;  %v3417_v21 = vld [vmem:[%s3958_s1 + $0xe] sm:$0x3]  ;;  %v3432_v25 = vld [vmem:[%s3116_s25 + $0xd8] sm:$0xff] }
  0x2a   : > { %2546 = vmatprep.mubr.msk.bf16.mxu1 %vm387_vm2, %v3268_v13  ;;  %2663 = vmatmul.mubr.msk.bf16.gmra.mrb[8].mxu0 %vm387_vm2, %v3268_v13  ;;  %v3423_v2 = vpack.c.bf16 %v3394_v5, %v3391_v4  ;;  %v260_v1 = vsel %vm254_vm1, %v245_v41, %v246_v45  ;;  %v261_v42 = vsel %vm254_vm1, %v244_v38, %v245_v41  ;;  %v248_v3 = vrot.slane %v3391_v4, 1 }
  0x2b   : > { %2666 = vmatprep.mubr.msk.bf16.mxu0 %vm387_vm2, %v3270_v16  ;;  %v357_v32 = vsel %vm335_vm3, %v312_v53, %v313_v18  ;;  %v358_v11 = vsel %vm335_vm3, %v311_v52, %v312_v53  ;;  %v356_v38 = vsel %vm335_vm3, %v313_v18, %v314_v22  ;;  %v3448_v41 = vpack.c.bf16 %v260_v1, %v261_v42 }
  0x2c   : > { %v316_v53 = vrot.slane %v3223_v54, 2  ;;  %v318_v18 = vrot.slane %v3233_v56, 2  ;;  %v319_v1 = vrot.slane %v3236_v57, 2 }
  0x2d   : > { %3983 = vst [vmem:[#allocation8_spill] sm:$0xff] %v3448_v41 }
  0x2e   : > { %v354_v56 = vsel %vm335_vm3, %v315_v61, %v316_v53 }
  0x31   : > { %2547 = vmatmul.mubr.msk.bf16.gmra.mrb[12].mxu1 %vm387_vm2, %v3270_v16 }
  0x32   : > { %2550 = vmatprep.mubr.msk.bf16.mxu1 %vm387_vm2, %v3310_v40  ;;  %2667 = vmatmul.mubr.msk.bf16.gmra.mrb[12].mxu0 %vm387_vm2, %v3310_v40  ;;  %v3452_v40 = vpack.c.bf16 %v357_v32, %v358_v11  ;;  %v204_v32 = vpack.c.bf16 %v3122_v9, %v3119_v8 }
  0x33   : > { %2684 = vmatprep.mubr.msk.bf16.mxu0 %vm387_vm2, %v3320_v50 }
  0x39   : > { %2551 = vmatmul.mubr.msk.bf16.gmra.mrb[16].mxu1 %vm387_vm2, %v3362_v24  ;;  %v355_v24 = vsel %vm335_vm3, %v314_v22, %v315_v61  ;;  %v322_v61 = vrot.slane %v3285_v26, 2 }
  0x3a   : > { %2554 = vmatprep.mubr.msk.bf16.mxu1 %vm387_vm2, %v3372_v37  ;;  %2685 = vmatmul.mubr.msk.bf16.vlgmr.msra.gmra.mrb[0].mxu0 %vm387_vm2, %v3376_v39  ;;  %v3440_v37 = vpack.c.bf16 %v262_v29, %v263_v31  ;;  %v3454_v52 = vpack.c.bf16 %v355_v24, %v356_v38  ;;  %v317_v29 = vrot.slane %v3226_v55, 2  ;;  %v351_v31 = vsel %vm335_vm3, %v318_v18, %v319_v1 }
  0x3b   : > { %2713 = vmatpush3.bf16.msra.mxu0 %v1538_v46  ;;  %2688 = vmatprep.mubr.msk.bf16.mxu0 %vm387_vm2, %v3382_v51  ;;  %v247_v46 = vrot.slane %v3432_v25, 1 }
  0x3c   : > { %3982 = vst [vmem:[#allocation7_spill] sm:$0xff] %v3440_v37  ;;  %3036 = vmatprep.subr.msk.bf16.mxu0 %vm430_vm0, %v3417_v21  ;;  %v353_v55 = vsel %vm335_vm3, %v316_v53, %v317_v29  ;;  %v323_v53 = vrot.slane %v3288_v30, 2 }
  0x3d   : > { %v258_v11 = vsel %vm254_vm1, %v247_v46, %v248_v3  ;;  %v259_v24 = vsel %vm254_vm1, %v246_v45, %v247_v46  ;;  %v352_v45 = vsel %vm335_vm3, %v317_v29, %v318_v18  ;;  %v3484_v42 = vpack.c.bf16 %v353_v55, %v354_v56 }
  0x3e   : > { %v3476_v22 = vpack.c.bf16 %v258_v11, %v259_v24  ;;  %v3486_v38 = vpack.c.bf16 %v351_v31, %v352_v45  ;;  %v320_v46 = vrot.slane %v3263_v7, 2  ;;  %v3505_v18 = vpack.c.bf16 %v3132_v14, %v3125_v10  ;;  %v3542_v45 = vld [vmem:[%s3116_s25 + $0xf8] sm:$0xff] }
  0x3f   : > { %v347_v11 = vsel %vm335_vm3, %v322_v61, %v323_v53  ;;  %v3513_v55 = vpack.c.bf16 %v3139_v17, %v3135_v15  ;;  %v324_v10 = vrot.slane %v3297_v33, 2  ;;  %v325_v14 = vrot.slane %v3300_v35, 2 }
  0x40   : > { %3984 = vst [vmem:[#allocation9_spill] sm:$0xff] %v3476_v22  ;;  %v350_v29 = vsel %vm335_vm3, %v319_v1, %v320_v46  ;;  %3985 = vst [vmem:[#allocation10_spill] sm:$0xff] %v3505_v18  ;;  %v814_v1 = vsel %vm430_vm0, %v3206_v49, 0  ;;  %v326_v15 = vrot.slane %v3343_v62, 2  ;;  %v327_v17 = vrot.slane %v3346_v63, 2  ;;  %v3535_v49 = vld [vmem:[%s3116_s25 + $0xf0] sm:$0xff] }
  0x41   : > { %2555 = vmatmul.mubr.msk.bf16.gmra.mrb[20].mxu1 %vm387_vm2, %v3440_v37  ;;  %v3563_v37 = vpack.c.bf16 %v3161_v27, %v3155_v23  ;;  %v330_v27 = vrot.slane %v3432_v25, 2 }
  0x42   : > { %2558 = vmatprep.mubr.msk.bf16.mxu1 %vm387_vm2, %v3448_v41  ;;  %2689 = vmatmul.mubr.msk.bf16.gmra.mrb[4].mxu0 %vm387_vm2, %v3452_v40  ;;  %v321_v41 = vrot.slane %v3266_v12, 2 }
  0x43   : > { %2692 = vmatprep.mubr.msk.bf16.mxu0 %vm387_vm2, %v3454_v52 }
  0x44   : > { %v349_v9 = vsel %vm335_vm3, %v320_v46, %v321_v41  ;;  %v348_v24 = vsel %vm335_vm3, %v321_v41, %v322_v61  ;;  %v3526_v41 = vld [vmem:[%s3958_s1 + $0x6] sm:$0x3]  ;;  %v250_v46 = vrot.slane %v3535_v49, 1  ;;  %v345_v61 = vsel %vm335_vm3, %v324_v10, %v325_v14 }
  0x45   : > { %v3515_v56 = vpack.c.bf16 %v349_v9, %v350_v29  ;;  %v3519_v31 = vpack.c.bf16 %v347_v11, %v348_v24  ;;  %v346_v9 = vsel %vm335_vm3, %v323_v53, %v324_v10  ;;  %v251_v29 = vrot.slane %v3542_v45, 1 }
  0x46   : > { %v343_v11 = vsel %vm335_vm3, %v326_v15, %v327_v17  ;;  %v344_v24 = vsel %vm335_vm3, %v325_v14, %v326_v15  ;;  %v3567_v53 = vpack.c.bf16 %v345_v61, %v346_v9  ;;  %v328_v10 = vrot.slane %v3357_v19, 2 }
  0x47   : > { %v329_v14 = vrot.slane %v3360_v20, 2  ;;  %v3575_v15 = vsel %vm254_vm1, %v250_v46, %v251_v29 }
  0x48   : > { %v342_v61 = vsel %vm335_vm3, %v327_v17, %v328_v10 }
  0x49   : > { %2559 = vmatmul.mubr.msk.bf16.gmra.mrb[24].mxu1 %vm387_vm2, %v3476_v22  ;;  %v340_v9 = vsel %vm335_vm3, %v329_v14, %v330_v27 }
  0x4a   : > { %2564 = vmatprep.mubr.msk.bf16.mxu1 %vm387_vm2, %v204_v32  ;;  %2693 = vmatmul.mubr.msk.bf16.gmra.mrb[8].mxu0 %vm387_vm2, %v3484_v42  ;;  %v249_v32 = vrot.slane %v3394_v5, 1 }
  0x4b   : > { %2696 = vmatprep.mubr.msk.bf16.mxu0 %vm387_vm2, %v3486_v38 }
  0x4c   : > { %v257_v22 = vsel %vm254_vm1, %v248_v3, %v249_v32  ;;  %v3986_v3 = vrot.slane %v3119_v8, 1 }
  0x4e   : > { %v3581_v23 = vsel %vm254_vm1, %v251_v29, %v3986_v3  ;;  %v3605_v29 = vpack.c.bf16 %v3223_v54, %v3175_v34  ;;  %v333_v3 = vrot.slane %v3535_v49, 2 }
  0x51   : > { %2565 = vmatmul.mubr.msk.bf16.vlgmr.msra.gmra.mrb[0].mxu1 %vm387_vm2, %v3505_v18  ;;  %v3570_v18 = vpack.c.bf16 %v343_v11, %v344_v24 }
  0x52   : > { %2568 = vmatprep.mubr.msk.bf16.mxu1 %vm387_vm2, %v3513_v55  ;;  %2593 = vmatpush3.bf16.msra.mxu1 %v814_v1  ;;  %v256_v1 = vsel %vm254_vm1, %v249_v32, %v250_v46  ;;  %v302_v32 = vpack.c.bf16 %v3581_v23, %v3575_v15  ;;  %v341_v46 = vsel %vm335_vm3, %v328_v10, %v329_v14  ;;  %v2378_v14 = vld [vmem:[%s3958_s1 + $0x10] sm:$0x3] }
  0x53   : > { %2697 = vmatmul.mubr.msk.bf16.gmra.mrb[12].mxu0 %vm387_vm2, %v3515_v56  ;;  %3031 = vmatprep.subr.msk.bf16.mxu1 %vm430_vm0, %v3526_v41  ;;  %v3565_v16 = vpack.c.bf16 %v256_v1, %v257_v22  ;;  %v331_v22 = vrot.slane %v3391_v4, 2  ;;  %v3607_v11 = vpack.c.bf16 %v341_v46, %v342_v61  ;;  %v332_v1 = vrot.slane %v3394_v5, 2 }
  0x54   : > { %2700 = vmatprep.mubr.msk.bf16.mxu0 %vm387_vm2, %v3519_v31  ;;  %v3629_v5 = vpack.c.bf16 %v3263_v7, %v3236_v57  ;;  %v3643_v10 = vpack.c.bf16 %v3285_v26, %v3266_v12  ;;  %v3647_v57 = vpack.c.bf16 %v3297_v33, %v3288_v30  ;;  %v1719_v7 = vsel %vm430_vm0, %v3417_v21, 0 }
  0x55   : > { %v339_v4 = vsel %vm335_vm3, %v330_v27, %v331_v22  ;;  %v337_v34 = vsel %vm335_vm3, %v332_v1, %v333_v3  ;;  %v338_v54 = vsel %vm335_vm3, %v331_v22, %v332_v1  ;;  %v3664_v12 = vpack.c.bf16 %v3343_v62, %v3300_v35  ;;  %v3993_v62 = vld [vmem:[#allocation6_spill] sm:$0xff] }
  0x56   : > { %v3609_v24 = vpack.c.bf16 %v339_v4, %v340_v9  ;;  %v3631_v17 = vpack.c.bf16 %v337_v34, %v338_v54  ;;  %v3669_v26 = vpack.c.bf16 %v3357_v19, %v3346_v63  ;;  %v217_v30 = vpack.c.bf16 %v3432_v25, %v3360_v20  ;;  %v3994_v63 = vld [vmem:[#allocation7_spill] sm:$0xff]  ;;  %v3995_v19 = vld [vmem:[#allocation8_spill] sm:$0xff] }
  0x57   : > { %v3987_v33 = vpack.c.bf16 %v3400_v48, %v3406_v28  ;;  %v995_v35 = vsel %vm430_vm0, %v3526_v41, 0  ;;  %v3997_v20 = vrot.slane %v3119_v8, 2  ;;  %v3856_v41 = vld [vmem:[%s3959_s2] ss:$0 sm:$0xff] }
  0x59   : > { %2569 = vmatmul.mubr.msk.bf16.gmra.mrb[4].mxu1 %vm387_vm2, %v3316_v44 }
  0x5a   : > { %2572 = vmatprep.mubr.msk.bf16.mxu1 %vm387_vm2, %v3563_v37 }
  0x5b   : > { %2701 = vmatmul.mubr.msk.bf16.gmra.mrb[16].mxu0 %vm387_vm2, %v3567_v53 }
  0x5c   : > { %2704 = vmatprep.mubr.msk.bf16.mxu0 %vm387_vm2, %v3570_v18 }
  0x61   : > { %2573 = vmatmul.mubr.msk.bf16.gmra.mrb[8].mxu1 %vm387_vm2, %v3334_v60 }
  0x62   : > { %2576 = vmatprep.mubr.msk.bf16.mxu1 %vm387_vm2, %v3605_v29 }
  0x63   : > { %2705 = vmatmul.mubr.msk.bf16.gmra.mrb[20].mxu0 %vm387_vm2, %v3607_v11 }
  0x64   : > { %2708 = vmatprep.mubr.msk.bf16.mxu0 %vm387_vm2, %v3609_v24 }
  0x69   : > { %2577 = vmatmul.mubr.msk.bf16.gmra.mrb[12].mxu1 %vm387_vm2, %v3370_v36 }
  0x6a   : > { %2580 = vmatprep.mubr.msk.bf16.mxu1 %vm387_vm2, %v3629_v5 }
  0x6b   : > { %2709 = vmatmul.mubr.msk.bf16.gmra.mrb[24].mxu0 %vm387_vm2, %v3631_v17 }
  0x6c   : > { %2714 = vmatprep.mubr.msk.bf16.mxu0 %vm387_vm2, %v3513_v55 }
  0x71   : > { %2581 = vmatmul.mubr.msk.bf16.gmra.mrb[16].mxu1 %vm387_vm2, %v3643_v10 }
  0x72   : > { %2584 = vmatprep.mubr.msk.bf16.mxu1 %vm387_vm2, %v3647_v57 }
  0x73   : > { %2715 = vmatmul.mubr.msk.bf16.vlgmr.msra.gmra.mrb[0].mxu0 %vm387_vm2, %v3316_v44 }
  0x74   : > { %2743 = vmatpush3.bf16.msra.mxu0 %v1719_v7  ;;  %2718 = vmatprep.mubr.msk.bf16.mxu0 %vm387_vm2, %v3563_v37 }
  0x75   : > { %3037 = vmatprep.subr.msk.bf16.mxu0 %vm430_vm0, %v2378_v14 }
  0x79   : > { %2585 = vmatmul.mubr.msk.bf16.gmra.mrb[20].mxu1 %vm387_vm2, %v3664_v12 }
  0x7a   : > { %2588 = vmatprep.mubr.msk.bf16.mxu1 %vm387_vm2, %v3669_v26 }
  0x7b   : > { %2719 = vmatmul.mubr.msk.bf16.gmra.mrb[4].mxu0 %vm387_vm2, %v3334_v60 }
  0x7c   : > { %2722 = vmatprep.mubr.msk.bf16.mxu0 %vm387_vm2, %v3605_v29 }
  0x81   : > { %2589 = vmatmul.mubr.msk.bf16.gmra.mrb[24].mxu1 %vm387_vm2, %v217_v30 }
  0x82   : > { %2594 = vmatprep.mubr.msk.bf16.mxu1 %vm387_vm2, %v3987_v33 }
  0x83   : > { %2723 = vmatmul.mubr.msk.bf16.gmra.mrb[8].mxu0 %vm387_vm2, %v3370_v36 }
  0x84   : > { %2726 = vmatprep.mubr.msk.bf16.mxu0 %vm387_vm2, %v3629_v5 }
  0x89   : > { %2595 = vmatmul.mubr.msk.bf16.vlgmr.msra.gmra.mrb[0].mxu1 %vm387_vm2, %v3320_v50  ;;  %v1900_v50 = vsel %vm430_vm0, %v2378_v14, 0 }
  0x8a   : > { %2598 = vmatprep.mubr.msk.bf16.mxu1 %vm387_vm2, %v3376_v39  ;;  %2623 = vmatpush3.bf16.msra.mxu1 %v995_v35 }
  0x8b   : > { %2727 = vmatmul.mubr.msk.bf16.gmra.mrb[12].mxu0 %vm387_vm2, %v3643_v10  ;;  %3033 = vmatprep.subr.msk.bf16.mxu1 %vm430_vm0, %v3086_v0  ;;  %v219_v0 = vpack.c.bf16 %v3542_v45, %v3535_v49 }
  0x8c   : > { %2730 = vmatprep.mubr.msk.bf16.mxu0 %vm387_vm2, %v3647_v57 }
  0x91   : > { %2599 = vmatmul.mubr.msk.bf16.gmra.mrb[4].mxu1 %vm387_vm2, %v3382_v51 }
  0x92   : > { %2602 = vmatprep.mubr.msk.bf16.mxu1 %vm387_vm2, %v3452_v40 }
  0x93   : > { %2731 = vmatmul.mubr.msk.bf16.gmra.mrb[16].mxu0 %vm387_vm2, %v3664_v12 }
  0x94   : > { %2734 = vmatprep.mubr.msk.bf16.mxu0 %vm387_vm2, %v3669_v26 }
  0x99   : > { %2603 = vmatmul.mubr.msk.bf16.gmra.mrb[8].mxu1 %vm387_vm2, %v3454_v52 }
  0x9a   : > { %2606 = vmatprep.mubr.msk.bf16.mxu1 %vm387_vm2, %v3484_v42 }
  0x9b   : > { %2735 = vmatmul.mubr.msk.bf16.gmra.mrb[20].mxu0 %vm387_vm2, %v217_v30 }
  0x9c   : > { %2738 = vmatprep.mubr.msk.bf16.mxu0 %vm387_vm2, %v3423_v2 }
  0xa1   : > { %2607 = vmatmul.mubr.msk.bf16.gmra.mrb[12].mxu1 %vm387_vm2, %v3486_v38 }
  0xa2   : > { %2610 = vmatprep.mubr.msk.bf16.mxu1 %vm387_vm2, %v3515_v56 }
  0xa3   : > { %2739 = vmatmul.mubr.msk.bf16.gmra.mrb[24].mxu0 %vm387_vm2, %v219_v0 }
  0xa4   : > { %2744 = vmatprep.mubr.msk.bf16.mxu0 %vm387_vm2, %v3189_v43  ;;  %v3988_v43 = vld [vmem:[#allocation10_spill] sm:$0xff] }
  0xa9   : > { %2611 = vmatmul.mubr.msk.bf16.gmra.mrb[16].mxu1 %vm387_vm2, %v3519_v31 }
  0xaa   : > { %2614 = vmatprep.mubr.msk.bf16.mxu1 %vm387_vm2, %v3567_v53 }
  0xab   : > { %2745 = vmatmul.mubr.msk.bf16.vlgmr.msra.gmra.mrb[0].mxu0 %vm387_vm2, %v3196_v47  ;;  %v3989_v47 = vld [vmem:[#allocation3_spill] sm:$0xff] }
  0xac   : > { %2773 = vmatpush3.bf16.msra.mxu0 %v1900_v50  ;;  %2748 = vmatprep.mubr.msk.bf16.mxu0 %vm387_vm2, %v3238_v58  ;;  %v3990_v58 = vld [vmem:[#allocation4_spill] sm:$0xff] }
  0xb1   : > { %2615 = vmatmul.mubr.msk.bf16.gmra.mrb[20].mxu1 %vm387_vm2, %v3570_v18 }
  0xb2   : > { %2618 = vmatprep.mubr.msk.bf16.mxu1 %vm387_vm2, %v3607_v11 }
  0xb3   : > { %2749 = vmatmul.mubr.msk.bf16.gmra.mrb[4].mxu0 %vm387_vm2, %v3240_v59  ;;  %v3991_v59 = vld [vmem:[#allocation2_spill] sm:$0xff] }
  0xb4   : > { %2752 = vmatprep.mubr.msk.bf16.mxu0 %vm387_vm2, %v3268_v13  ;;  %v3992_v13 = vld [vmem:[#allocation5_spill] sm:$0xff] }
  0xb9   : > { %2619 = vmatmul.mubr.msk.bf16.gmra.mrb[24].mxu1 %vm387_vm2, %v3609_v24 }
  0xba   : > { %2624 = vmatprep.mubr.msk.bf16.mxu1 %vm387_vm2, %v3988_v43 }
  0xbb   : > { %2753 = vmatmul.mubr.msk.bf16.gmra.mrb[8].mxu0 %vm387_vm2, %v3989_v47 }
  0xbc   : > { %2756 = vmatprep.mubr.msk.bf16.mxu0 %vm387_vm2, %v3990_v58 }
  0xc1   : > { %2625 = vmatmul.mubr.msk.bf16.vlgmr.msra.gmra.mrb[0].mxu1 %vm387_vm2, %v3513_v55 }
  0xc2   : > { %2628 = vmatprep.mubr.msk.bf16.mxu1 %vm387_vm2, %v3316_v44  ;;  %2803 = vmatpush3.bf16.msra.mxu1 %v3991_v59  ;;  %v3996_v44 = vld [vmem:[#allocation9_spill] sm:$0xff] }
  0xc3   : > { %2757 = vmatmul.mubr.msk.bf16.gmra.mrb[12].mxu0 %vm387_vm2, %v3992_v13 }
  0xc4   : > { %2760 = vmatprep.mubr.msk.bf16.mxu0 %vm387_vm2, %v3993_v62 }
  0xc9   : > { %2629 = vmatmul.mubr.msk.bf16.gmra.mrb[4].mxu1 %vm387_vm2, %v3563_v37 }
  0xca   : > { %2632 = vmatprep.mubr.msk.bf16.mxu1 %vm387_vm2, %v3334_v60 }
  0xcb   : > { %2761 = vmatmul.mubr.msk.bf16.gmra.mrb[16].mxu0 %vm387_vm2, %v3994_v63 }
  0xcc   : > { %2764 = vmatprep.mubr.msk.bf16.mxu0 %vm387_vm2, %v3995_v19 }
  0xd1   : > { %2633 = vmatmul.mubr.msk.bf16.gmra.mrb[8].mxu1 %vm387_vm2, %v3605_v29 }
  0xd2   : > { %2636 = vmatprep.mubr.msk.bf16.mxu1 %vm387_vm2, %v3370_v36 }
  0xd3   : > { %2765 = vmatmul.mubr.msk.bf16.gmra.mrb[20].mxu0 %vm387_vm2, %v3996_v44 }
  0xd4   : > { %2768 = vmatprep.mubr.msk.bf16.mxu0 %vm387_vm2, %v3565_v16 }
  0xd9   : > { %2637 = vmatmul.mubr.msk.bf16.gmra.mrb[12].mxu1 %vm387_vm2, %v3629_v5 }
  0xda   : > { %2640 = vmatprep.mubr.msk.bf16.mxu1 %vm387_vm2, %v3643_v10 }
  0xdb   : > { %2769 = vmatmul.mubr.msk.bf16.gmra.mrb[24].mxu0 %vm387_vm2, %v302_v32 }
  0xdc   : > { %2774 = vmatprep.mubr.msk.bf16.mxu0 %vm387_vm2, %v3376_v39 }
  0xe1   : > { %2641 = vmatmul.mubr.msk.bf16.gmra.mrb[16].mxu1 %vm387_vm2, %v3647_v57 }
  0xe2   : > { %2644 = vmatprep.mubr.msk.bf16.mxu1 %vm387_vm2, %v3664_v12 }
  0xe3   : > { %2775 = vmatmul.mubr.msk.bf16.vlgmr.msra.gmra.mrb[0].mxu0 %vm387_vm2, %v3382_v51 }
  0xe4   : > { %2778 = vmatprep.mubr.msk.bf16.mxu0 %vm387_vm2, %v3452_v40  ;;  %v334_v40 = vrot.slane %v3542_v45, 2 }
  0xe6   : > { %v336_v60 = vsel %vm335_vm3, %v333_v3, %v334_v40  ;;  %v367_v36 = vsel %vm335_vm3, %v334_v40, %v3997_v20 }
  0xe7   : > { %v383_v37 = vpack.c.bf16 %v367_v36, %v336_v60 }
  0xe9   : > { %2645 = vmatmul.mubr.msk.bf16.gmra.mrb[20].mxu1 %vm387_vm2, %v3669_v26 }
  0xea   : > { %2648 = vmatprep.mubr.msk.bf16.mxu1 %vm387_vm2, %v217_v30 }
  0xeb   : > { %2779 = vmatmul.mubr.msk.bf16.gmra.mrb[4].mxu0 %vm387_vm2, %v3454_v52 }
  0xec   : > { %2782 = vmatprep.mubr.msk.bf16.mxu0 %vm387_vm2, %v3484_v42 }
  0xf1   : > { %2649 = vmatmul.mubr.msk.bf16.gmra.mrb[24].mxu1 %vm387_vm2, %v3423_v2 }
  0xf2   : > { %2670 = vmatprep.mubr.msk.bf16.mxu1 %vm387_vm2, %v3992_v13 }
  0xf3   : > { %2783 = vmatmul.mubr.msk.bf16.gmra.mrb[8].mxu0 %vm387_vm2, %v3486_v38 }
  0xf4   : > { %2786 = vmatprep.mubr.msk.bf16.mxu0 %vm387_vm2, %v3515_v56 }
  0xf9   : > { %2671 = vmatmul.mubr.msk.bf16.vlgmr.msra.gmra.mrb[16].mxu1 %vm387_vm2, %v3993_v62 }
  0xfa   : > { %2674 = vmatprep.mubr.msk.bf16.mxu1 %vm387_vm2, %v3994_v63 }
  0xfb   : > { %2787 = vmatmul.mubr.msk.bf16.gmra.mrb[12].mxu0 %vm387_vm2, %v3519_v31 }
  0xfc   : > { %2790 = vmatprep.mubr.msk.bf16.mxu0 %vm387_vm2, %v3567_v53 }
 0x101   : > { %2675 = vmatmul.mubr.msk.bf16.gmra.mrb[20].mxu1 %vm387_vm2, %v3995_v19 }
 0x102   : > { %2678 = vmatprep.mubr.msk.bf16.mxu1 %vm387_vm2, %v3996_v44 }
 0x103   : > { %2791 = vmatmul.mubr.msk.bf16.gmra.mrb[16].mxu0 %vm387_vm2, %v3570_v18 }
 0x104   : > { %2794 = vmatprep.mubr.msk.bf16.mxu0 %vm387_vm2, %v3607_v11 }
 0x109   : > { %2679 = vmatmul.mubr.msk.bf16.gmra.mrb[24].mxu1 %vm387_vm2, %v3565_v16 }
 0x10b   : > { %2795 = vmatmul.mubr.msk.bf16.gmra.mrb[20].mxu0 %vm387_vm2, %v3609_v24 }
 0x10c   : > { %2798 = vmatprep.mubr.msk.bf16.mxu0 %vm387_vm2, %v3631_v17 }
 0x113   : > { %2799 = vmatmul.mubr.msk.bf16.gmra.mrb[24].mxu0 %vm387_vm2, %v383_v37 }
 0x194   : > { %v2626_v16 = vpop.f32.mrb[0].mxu1 }
 0x195   : > { %v1031_v39 = vpop.f32.mrb[1].mxu1 }
 0x196   : > { %v2627_v51 = vpop.f32.mrb[2].mxu1 }
 0x197   : > { %v1034_v48 = vpop.f32.mrb[3].mxu1 }
 0x19c   : > { %v2630_v28 = vpop.f32.mrb[4].mxu1 }
 0x19d   : > { %v1047_v21 = vpop.f32.mrb[5].mxu1 }
 0x19e   : > { %v2631_v2 = vpop.f32.mrb[6].mxu1 }
 0x19f   : > { %v1050_v25 = vpop.f32.mrb[7].mxu1 }
 0x1a4   : > { %v2634_v52 = vpop.f32.mrb[8].mxu1 }
 0x1a5   : > { %v1063_v42 = vpop.f32.mrb[9].mxu1 }
 0x1a6   : > { %v3841_v38 = vpop.f32.mrb[10].mxu1 }
 0x1a7   : > { %v3843_v8 = vpop.f32.mrb[11].mxu1 }
 0x1ac   : > { %v3845_v6 = vpop.f32.mrb[12].mxu1 }
 0x1ad   : > { %v3847_v18 = vpop.f32.mrb[13].mxu1 }
 0x1ae   : > { %v3849_v55 = vpop.f32.mrb[14].mxu1 }
 0x1af   : > { %v3851_v56 = vpop.f32.mrb[15].mxu1 }
 0x1b6   : > { %v2776_v31 = vpop.f32.mrb[0].mxu0 }
 0x1b7   : > { %v2804_v49 = vadd.f32 %v2776_v31, %v2626_v16  ;;  %v1936_v45 = vpop.f32.mrb[1].mxu0 }
 0x1b8   : > { %v2805_v53 = vadd.f32 %v1936_v45, %v1031_v39  ;;  %v2777_v15 = vpop.f32.mrb[2].mxu0 }
 0x1b9   : > { %v2084_v23 = vadd.f32 %v2804_v49, %v3856_v41  ;;  %v2806_v27 = vadd.f32 %v2777_v15, %v2627_v51  ;;  %v1939_v22 = vpop.f32.mrb[3].mxu0 }
 0x1ba   : > { %v2082_v32 = vadd.f32 %v2805_v53, %v3856_v41  ;;  %v2807_v46 = vadd.f32 %v1939_v22, %v1034_v48 }
 0x1bb   : > { %v2112_v61 = vmax.f32 %v2084_v23, 0.0  ;;  %v2085_v4 = vadd.f32 %v2806_v27, %v3856_v41 }
 0x1bc   : > { %v2110_v9 = vmax.f32 %v2082_v32, 0.0  ;;  %v2083_v29 = vadd.f32 %v2807_v46, %v3856_v41 }
 0x1bd   : > { %v2140_v11 = vmin.f32 %v2112_v61, 6.0  ;;  %v2113_v24 = vmax.f32 %v2085_v4, 0.0 }
 0x1be   : > { %v2138_v1 = vmin.f32 %v2110_v9, 6.0  ;;  %v2111_v3 = vmax.f32 %v2083_v29, 0.0  ;;  %v2780_v34 = vpop.f32.mrb[4].mxu0 }
 0x1bf   : > { %2170 = vst.msk [vmem:[%s3865_s16 + $0x10] sm:$0xff] %vm2166_vm4, %v2140_v11  ;;  %v2141_v54 = vmin.f32 %v2113_v24, 6.0  ;;  %v2808_v5 = vadd.f32 %v2780_v34, %v2630_v28  ;;  %v1952_v17 = vpop.f32.mrb[5].mxu0 }
 0x1c0   : > { %2167 = vst.msk [vmem:[%s3865_s16] sm:$0xff] %vm2166_vm4, %v2138_v1  ;;  %v2139_v10 = vmin.f32 %v2111_v3, 6.0  ;;  %v2809_v57 = vadd.f32 %v1952_v17, %v1047_v21  ;;  %v2781_v7 = vpop.f32.mrb[6].mxu0 }
 0x1c1   : > { %2171 = vst.msk [vmem:[%s3865_s16 + $0x18] sm:$0x3f] %vm2168_vm5, %v2141_v54  ;;  %v2088_v14 = vadd.f32 %v2808_v5, %v3856_v41  ;;  %v2810_v12 = vadd.f32 %v2781_v7, %v2631_v2  ;;  %v1955_v26 = vpop.f32.mrb[7].mxu0 }
 0x1c2   : > { %2169 = vst.msk [vmem:[%s3865_s16 + $0x8] sm:$0x3f] %vm2168_vm5, %v2139_v10  ;;  %v2086_v30 = vadd.f32 %v2809_v57, %v3856_v41  ;;  %v2811_v33 = vadd.f32 %v1955_v26, %v1050_v25 }
 0x1c3   : > { %v2116_v35 = vmax.f32 %v2088_v14, 0.0  ;;  %v2089_v0 = vadd.f32 %v2810_v12, %v3856_v41 }
 0x1c4   : > { %v2114_v50 = vmax.f32 %v2086_v30, 0.0  ;;  %v2087_v43 = vadd.f32 %v2811_v33, %v3856_v41 }
 0x1c5   : > { %v2144_v47 = vmin.f32 %v2116_v35, 6.0  ;;  %v2117_v58 = vmax.f32 %v2089_v0, 0.0 }
 0x1c6   : > { %v2142_v59 = vmin.f32 %v2114_v50, 6.0  ;;  %v2115_v13 = vmax.f32 %v2087_v43, 0.0  ;;  %v2784_v62 = vpop.f32.mrb[8].mxu0 }
 0x1c7   : > { %2174 = vst.msk [vmem:[%s3865_s16 + $0x30] sm:$0xff] %vm2166_vm4, %v2144_v47  ;;  %v2145_v63 = vmin.f32 %v2117_v58, 6.0  ;;  %v2812_v19 = vadd.f32 %v2784_v62, %v2634_v52  ;;  %v1968_v44 = vpop.f32.mrb[9].mxu0 }
 0x1c8   : > { %2172 = vst.msk [vmem:[%s3865_s16 + $0x20] sm:$0xff] %vm2166_vm4, %v2142_v59  ;;  %v2143_v40 = vmin.f32 %v2115_v13, 6.0  ;;  %v2813_v60 = vadd.f32 %v1968_v44, %v1063_v42  ;;  %v2785_v20 = vpop.f32.mrb[10].mxu0 }
 0x1c9   : > { %2175 = vst.msk [vmem:[%s3865_s16 + $0x38] sm:$0x3f] %vm2168_vm5, %v2145_v63  ;;  %v2092_v36 = vadd.f32 %v2812_v19, %v3856_v41  ;;  %v2814_v37 = vadd.f32 %v2785_v20, %v3841_v38  ;;  %v1971_v16 = vpop.f32.mrb[11].mxu0 }
 0x1ca   : > { %2173 = vst.msk [vmem:[%s3865_s16 + $0x28] sm:$0x3f] %vm2168_vm5, %v2143_v40  ;;  %v2090_v39 = vadd.f32 %v2813_v60, %v3856_v41  ;;  %v2815_v51 = vadd.f32 %v1971_v16, %v3843_v8 }
 0x1cb   : > { %v2120_v48 = vmax.f32 %v2092_v36, 0.0  ;;  %v2093_v28 = vadd.f32 %v2814_v37, %v3856_v41 }
 0x1cc   : > { %v2118_v21 = vmax.f32 %v2090_v39, 0.0  ;;  %v2091_v2 = vadd.f32 %v2815_v51, %v3856_v41  ;;  %v2672_v25 = vpop.f32.mrb[16].mxu1 }
 0x1cd   : > { %v2148_v52 = vmin.f32 %v2120_v48, 6.0  ;;  %v2121_v42 = vmax.f32 %v2093_v28, 0.0  ;;  %v1276_v38 = vpop.f32.mrb[17].mxu1 }
 0x1ce   : > { %v2146_v31 = vmin.f32 %v2118_v21, 6.0  ;;  %v2119_v49 = vmax.f32 %v2091_v2, 0.0  ;;  %v2788_v45 = vpop.f32.mrb[12].mxu0  ;;  %v2673_v53 = vpop.f32.mrb[18].mxu1 }
 0x1cf   : > { %2178 = vst.msk [vmem:[%s3865_s16 + $0x50] sm:$0xff] %vm2166_vm4, %v2148_v52  ;;  %v2149_v8 = vmin.f32 %v2121_v42, 6.0  ;;  %v2816_v15 = vadd.f32 %v2788_v45, %v3845_v6  ;;  %v1984_v23 = vpop.f32.mrb[13].mxu0  ;;  %v1279_v27 = vpop.f32.mrb[19].mxu1 }
 0x1d0   : > { %2176 = vst.msk [vmem:[%s3865_s16 + $0x40] sm:$0xff] %vm2166_vm4, %v2146_v31  ;;  %v2147_v22 = vmin.f32 %v2119_v49, 6.0  ;;  %v2817_v32 = vadd.f32 %v1984_v23, %v3847_v18  ;;  %v2789_v46 = vpop.f32.mrb[14].mxu0 }
 0x1d1   : > { %2179 = vst.msk [vmem:[%s3865_s16 + $0x58] sm:$0x3f] %vm2168_vm5, %v2149_v8  ;;  %v2096_v61 = vadd.f32 %v2816_v15, %v3856_v41  ;;  %v2818_v4 = vadd.f32 %v2789_v46, %v3849_v55  ;;  %v1987_v9 = vpop.f32.mrb[15].mxu0 }
 0x1d2   : > { %2177 = vst.msk [vmem:[%s3865_s16 + $0x48] sm:$0x3f] %vm2168_vm5, %v2147_v22  ;;  %v2094_v6 = vadd.f32 %v2817_v32, %v3856_v41  ;;  %v2819_v29 = vadd.f32 %v1987_v9, %v3851_v56 }
 0x1d3   : > { %v2124_v11 = vmax.f32 %v2096_v61, 0.0  ;;  %v2097_v24 = vadd.f32 %v2818_v4, %v3856_v41 }
 0x1d4   : > { %v2122_v18 = vmax.f32 %v2094_v6, 0.0  ;;  %v2095_v1 = vadd.f32 %v2819_v29, %v3856_v41  ;;  %v2676_v3 = vpop.f32.mrb[20].mxu1 }
 0x1d5   : > { %v2152_v34 = vmin.f32 %v2124_v11, 6.0  ;;  %v2125_v54 = vmax.f32 %v2097_v24, 0.0  ;;  %v1292_v55 = vpop.f32.mrb[21].mxu1 }
 0x1d6   : > { %v2150_v5 = vmin.f32 %v2122_v18, 6.0  ;;  %v2123_v17 = vmax.f32 %v2095_v1, 0.0  ;;  %v2792_v10 = vpop.f32.mrb[16].mxu0  ;;  %v2677_v57 = vpop.f32.mrb[22].mxu1 }
 0x1d7   : > { %2182 = vst.msk [vmem:[%s3865_s16 + $0x70] sm:$0xff] %vm2166_vm4, %v2152_v34  ;;  %v2153_v56 = vmin.f32 %v2125_v54, 6.0  ;;  %v2820_v7 = vadd.f32 %v2792_v10, %v2672_v25  ;;  %v2000_v14 = vpop.f32.mrb[17].mxu0  ;;  %v1295_v12 = vpop.f32.mrb[23].mxu1 }
 0x1d8   : > { %2180 = vst.msk [vmem:[%s3865_s16 + $0x60] sm:$0xff] %vm2166_vm4, %v2150_v5  ;;  %v2151_v26 = vmin.f32 %v2123_v17, 6.0  ;;  %v2821_v30 = vadd.f32 %v2000_v14, %v1276_v38  ;;  %v2793_v33 = vpop.f32.mrb[18].mxu0 }
 0x1d9   : > { %2183 = vst.msk [vmem:[%s3865_s16 + $0x78] sm:$0x3f] %vm2168_vm5, %v2153_v56  ;;  %v2100_v35 = vadd.f32 %v2820_v7, %v3856_v41  ;;  %v2822_v0 = vadd.f32 %v2793_v33, %v2673_v53  ;;  %v2003_v50 = vpop.f32.mrb[19].mxu0 }
 0x1da   : > { %2181 = vst.msk [vmem:[%s3865_s16 + $0x68] sm:$0x3f] %vm2168_vm5, %v2151_v26  ;;  %v2098_v43 = vadd.f32 %v2821_v30, %v3856_v41  ;;  %v2823_v47 = vadd.f32 %v2003_v50, %v1279_v27 }
 0x1db   : > { %v2128_v58 = vmax.f32 %v2100_v35, 0.0  ;;  %v2101_v59 = vadd.f32 %v2822_v0, %v3856_v41 }
 0x1dc   : > { %v2126_v13 = vmax.f32 %v2098_v43, 0.0  ;;  %v2099_v62 = vadd.f32 %v2823_v47, %v3856_v41  ;;  %v2680_v63 = vpop.f32.mrb[24].mxu1 }
 0x1dd   : > { %v2156_v19 = vmin.f32 %v2128_v58, 6.0  ;;  %v2129_v44 = vmax.f32 %v2101_v59, 0.0  ;;  %v1308_v40 = vpop.f32.mrb[25].mxu1 }
 0x1de   : > { %v2154_v60 = vmin.f32 %v2126_v13, 6.0  ;;  %v2127_v20 = vmax.f32 %v2099_v62, 0.0  ;;  %v2796_v36 = vpop.f32.mrb[20].mxu0  ;;  %v2681_v37 = vpop.f32.mrb[26].mxu1 }
 0x1df   : > { %2186 = vst.msk [vmem:[%s3865_s16 + $0x90] sm:$0xff] %vm2166_vm4, %v2156_v19  ;;  %v2157_v16 = vmin.f32 %v2129_v44, 6.0  ;;  %v2824_v39 = vadd.f32 %v2796_v36, %v2676_v3  ;;  %v2016_v51 = vpop.f32.mrb[21].mxu0  ;;  %v1311_v48 = vpop.f32.mrb[27].mxu1 }
 0x1e0   : > { %2184 = vst.msk [vmem:[%s3865_s16 + $0x80] sm:$0xff] %vm2166_vm4, %v2154_v60  ;;  %v2155_v28 = vmin.f32 %v2127_v20, 6.0  ;;  %v2825_v21 = vadd.f32 %v2016_v51, %v1292_v55  ;;  %v2797_v2 = vpop.f32.mrb[22].mxu0 }
 0x1e1   : > { %2187 = vst.msk [vmem:[%s3865_s16 + $0x98] sm:$0x3f] %vm2168_vm5, %v2157_v16  ;;  %v2104_v25 = vadd.f32 %v2824_v39, %v3856_v41  ;;  %v2826_v52 = vadd.f32 %v2797_v2, %v2677_v57  ;;  %v2019_v42 = vpop.f32.mrb[23].mxu0 }
 0x1e2   : > { %2185 = vst.msk [vmem:[%s3865_s16 + $0x88] sm:$0x3f] %vm2168_vm5, %v2155_v28  ;;  %v2102_v38 = vadd.f32 %v2825_v21, %v3856_v41  ;;  %v2827_v31 = vadd.f32 %v2019_v42, %v1295_v12 }
 0x1e3   : > { %v2132_v49 = vmax.f32 %v2104_v25, 0.0  ;;  %v2105_v45 = vadd.f32 %v2826_v52, %v3856_v41 }
 0x1e4   : > { %v2130_v53 = vmax.f32 %v2102_v38, 0.0  ;;  %v2103_v8 = vadd.f32 %v2827_v31, %v3856_v41 }
 0x1e5   : > { %v2160_v15 = vmin.f32 %v2132_v49, 6.0  ;;  %v2133_v23 = vmax.f32 %v2105_v45, 0.0 }
 0x1e6   : > { %v2158_v27 = vmin.f32 %v2130_v53, 6.0  ;;  %v2131_v22 = vmax.f32 %v2103_v8, 0.0  ;;  %v2800_v32 = vpop.f32.mrb[24].mxu0 }
 0x1e7   : > { %2190 = vst.msk [vmem:[%s3865_s16 + $0xb0] sm:$0xff] %vm2166_vm4, %v2160_v15  ;;  %v2161_v46 = vmin.f32 %v2133_v23, 6.0  ;;  %v2828_v61 = vadd.f32 %v2800_v32, %v2680_v63  ;;  %v2032_v4 = vpop.f32.mrb[25].mxu0 }
 0x1e8   : > { %2188 = vst.msk [vmem:[%s3865_s16 + $0xa0] sm:$0xff] %vm2166_vm4, %v2158_v27  ;;  %v2159_v9 = vmin.f32 %v2131_v22, 6.0  ;;  %v2829_v6 = vadd.f32 %v2032_v4, %v1308_v40  ;;  %v2801_v29 = vpop.f32.mrb[26].mxu0 }
 0x1e9   : > { %2191 = vst.msk [vmem:[%s3865_s16 + $0xb8] sm:$0x3f] %vm2168_vm5, %v2161_v46  ;;  %v2108_v11 = vadd.f32 %v2828_v61, %v3856_v41  ;;  %v2830_v24 = vadd.f32 %v2801_v29, %v2681_v37  ;;  %v2035_v18 = vpop.f32.mrb[27].mxu0 }
 0x1ea   : > { %2189 = vst.msk [vmem:[%s3865_s16 + $0xa8] sm:$0x3f] %vm2168_vm5, %v2159_v9  ;;  %v2106_v1 = vadd.f32 %v2829_v6, %v3856_v41  ;;  %v2831_v3 = vadd.f32 %v2035_v18, %v1311_v48 }
 0x1eb   : > { %v2136_v34 = vmax.f32 %v2108_v11, 0.0  ;;  %v2109_v54 = vadd.f32 %v2830_v24, %v3856_v41 }
 0x1ec   : > { %v2134_v55 = vmax.f32 %v2106_v1, 0.0  ;;  %v2107_v5 = vadd.f32 %v2831_v3, %v3856_v41 }
 0x1ed   : > { %v2164_v17 = vmin.f32 %v2136_v34, 6.0  ;;  %v2137_v10 = vmax.f32 %v2109_v54, 0.0 }
 0x1ee   : > { %v2162_v57 = vmin.f32 %v2134_v55, 6.0  ;;  %v2135_v56 = vmax.f32 %v2107_v5, 0.0 }
 0x1ef   : > { %2194 = vst.msk [vmem:[%s3865_s16 + $0xd0] sm:$0xff] %vm2166_vm4, %v2164_v17  ;;  %v2165_v7 = vmin.f32 %v2137_v10, 6.0 }
 0x1f0   : > { %2192 = vst.msk [vmem:[%s3865_s16 + $0xc0] sm:$0xff] %vm2166_vm4, %v2162_v57  ;;  %v2163_v14 = vmin.f32 %v2135_v56, 6.0 }
 0x1f1   : > { %2195 = vst.msk [vmem:[%s3865_s16 + $0xd8] sm:$0x3f] %vm2168_vm5, %v2165_v7 }
 0x1f2   : > { %2193 = vst.msk [vmem:[%s3865_s16 + $0xc8] sm:$0x3f] %vm2168_vm5, %v2163_v14 }
 0x1f3 PF: > { %s13_s12 = sadd.s32 1, %s3053_s12  }
 0x1f4   : > { %p10_p4 = scmp.ge.s32.totalorder %s13_s12, 4  }
 0x1f6   :  { %12 = sbr.rel (!%p10_p4) target bundleno = 1 (0x1), region = 70 }

</bundles_post_ra>
